<compile_context>
chip_gen: v5e
topology: v5e:2x2
jax: 0.10.0
libtpu: 0.0.40
codegen_flags: <defaults>
</compile_context>

<pallas_src>
import math
from functools import partial

import jax
import jax.numpy as jnp
from jax.experimental import pallas as pl
from jax.experimental.pallas import tpu as pltpu


def transformer_block_kernel(x_ref, wqkv_ref, wo_ref, bo_ref,
                             ln1_s_ref, ln1_b_ref, ln2_s_ref, ln2_b_ref,
                             w1_ref, b1_ref, w2_ref, b2_ref, out_ref,
                             *, num_heads):
    _, T, D = x_ref.shape
    H = num_heads
    hd = D // H
    eps = 1e-5
    mm_dtype = wqkv_ref.dtype          # bf16 matmul operands, f32 accumulation

    def layernorm(v, scale, shift):
        mean = jnp.mean(v, axis=-1, keepdims=True)
        var = jnp.mean((v - mean) ** 2, axis=-1, keepdims=True)   # unbiased=False
        return scale * (v - mean) * jax.lax.rsqrt(var + eps) + shift

    def gelu(v):
        c = jnp.float32(math.sqrt(2.0 / math.pi))
        return 0.5 * v * (1.0 + jnp.tanh(c * (v + 0.044715 * v ** 3)))

    x = x_ref[0].astype(jnp.float32)                         # (T, D)

    # ---------------- block 1: LN1 -> causal MHA -> residual ----------------
    shortcut = x
    xn = layernorm(x, ln1_s_ref[0], ln1_b_ref[0])

    # Fused QKV projection: a single (T, D) @ (D, 3D) matmul (bf16 in, f32 acc).
    qkv = jnp.dot(xn.astype(mm_dtype), wqkv_ref[...],
                  preferred_element_type=jnp.float32)        # (T, 3D) f32
    inv_sqrt_hd = jnp.float32(1.0 / math.sqrt(hd))
    q = qkv[:, :D] * inv_sqrt_hd                             # fold 1/sqrt(hd) once
    k = qkv[:, D:2 * D]
    v = qkv[:, 2 * D:]

    rows = jax.lax.broadcasted_iota(jnp.int32, (T, T), 0)
    cols = jax.lax.broadcasted_iota(jnp.int32, (T, T), 1)
    causal = cols > rows                                     # True => future token
    neg_big = jnp.float32(-1e30)                             # finite sentinel

    # Per-head attention core as small 2-D matmuls on static lane slices (heads
    # unrolled).  TODO(synk): at realistic T/H, move heads + KV tiles onto the
    # grid with a flash-style online softmax (running max/sum in VMEM scratch).
    ctx_heads = []
    for h in range(H):
        sl = slice(h * hd, (h + 1) * hd)
        q_h = q[:, sl].astype(mm_dtype)                      # (T, hd)
        k_h = k[:, sl].astype(mm_dtype)
        v_h = v[:, sl].astype(mm_dtype)
        # q_h @ k_h.T without materializing the transpose.
        s = jax.lax.dot_general(q_h, k_h, (((1,), (1,)), ((), ())),
                                preferred_element_type=jnp.float32)   # (T, T)
        s = jnp.where(causal, neg_big, s)
        s_max = jnp.max(s, axis=-1, keepdims=True)
        p = jnp.exp(s - s_max)
        denom = jnp.sum(p, axis=-1, keepdims=True)
        p = p * pl.reciprocal(denom, approx=True)            # EUP vrcp; off the VALU
        # dropout on attention weights is identity (drop_rate = 0.0)
        ctx_heads.append(jnp.dot(p.astype(mm_dtype), v_h,
                                 preferred_element_type=jnp.float32))  # (T, hd)

    # Head merge along lanes, then ONE (T, D) @ (D, D) output projection (K = D).
    ctx = jnp.concatenate(ctx_heads, axis=1)                 # (T, D)
    attn = jnp.dot(ctx.astype(mm_dtype), wo_ref[...],
                   preferred_element_type=jnp.float32) + bo_ref[0]
    x1 = attn + shortcut                                     # drop_shortcut = identity

    # ---------------- block 2: LN2 -> FFN -> residual ----------------
    xn2 = layernorm(x1, ln2_s_ref[0], ln2_b_ref[0])
    h1 = jnp.dot(xn2.astype(mm_dtype), w1_ref[...],
                 preferred_element_type=jnp.float32) + b1_ref[0]
    h1 = gelu(h1)
    h2 = jnp.dot(h1.astype(mm_dtype), w2_ref[...],
                 preferred_element_type=jnp.float32) + b2_ref[0]
    out_ref[...] = (h2 + x1).reshape(1, T, D).astype(out_ref.dtype)


def transformer_block(x, params, num_heads, matmul_dtype=jnp.bfloat16):
    B, T, D = x.shape
    H4 = 4 * D
    (wq, wk, wv, wo, bo, ln1_s, ln1_b, ln2_s, ln2_b, w1, b1, w2, b2) = params

    # Wrapper-side (free) layout plumbing: fuse the QKV weights into one (D, 3D)
    # operand and cast matmul weights to bf16 (halves weight VMEM, full-rate MXU
    # on every generation).  Biases / LN params stay f32.
    wqkv = jnp.concatenate([wq, wk, wv], axis=1).astype(matmul_dtype)   # (D, 3D)
    wo_c = wo.astype(matmul_dtype)
    w1_c = w1.astype(matmul_dtype)
    w2_c = w2.astype(matmul_dtype)

    kernel = partial(transformer_block_kernel, num_heads=num_heads)

    def weight_spec(shape):                  # same (full) block every grid step
        n = len(shape)
        return pl.BlockSpec(shape, lambda b, _n=n: (0,) * _n)

    row_spec = pl.BlockSpec((1, T, D), lambda b: (b, 0, 0))

    in_specs = [
        row_spec,                                       # x: one batch row-block / step
        weight_spec((D, 3 * D)),                        # fused Wqkv
        weight_spec((D, D)),                            # Wo
        weight_spec((1, D)),                            # bo
        weight_spec((1, D)), weight_spec((1, D)),       # ln1 scale / shift
        weight_spec((1, D)), weight_spec((1, D)),       # ln2 scale / shift
        weight_spec((D, H4)), weight_spec((1, H4)),     # ffn W1, b1
        weight_spec((H4, D)), weight_spec((1, D)),      # ffn W2, b2
    ]

    # TODO(synk): at realistic sizes (D, T >= 1k) further tile: 256-512-row blocks
    # ("parallel"), a trailing "arbitrary" K/N reduction axis for the FFN sized to
    # the generation's VMEM (64 MiB on v7x) with an explicit vmem_limit_bytes, and
    # a flash-style online softmax over KV tiles.  At D >= 128 the output store is
    # already lane-dense; at this toy D=32 the masked stores are negligible.
    return pl.pallas_call(
        kernel,
        out_shape=jax.ShapeDtypeStruct((B, T, D), x.dtype),
        grid_spec=pltpu.PrefetchScalarGridSpec(
            num_scalar_prefetch=0,
            grid=(B,),
            in_specs=in_specs,
            out_specs=row_spec,
        ),
        compiler_params=pltpu.CompilerParams(
            dimension_semantics=("parallel",)),
    )(x, wqkv, wo_c, bo, ln1_s, ln1_b, ln2_s, ln2_b, w1_c, b1, w2_c, b2)


def reference_block(x, params, num_heads):
    (wq, wk, wv, wo, bo, ln1_s, ln1_b, ln2_s, ln2_b, w1, b1, w2, b2) = params
    eps = 1e-5

    def ln(v, s, sh):
        m = jnp.mean(v, axis=-1, keepdims=True)
        var = jnp.mean((v - m) ** 2, axis=-1, keepdims=True)
        return s * (v - m) / jnp.sqrt(var + eps) + sh

    def gelu(v):
        c = math.sqrt(2.0 / math.pi)
        return 0.5 * v * (1.0 + jnp.tanh(c * (v + 0.044715 * v ** 3)))

    B, T, D = x.shape
    hd = D // num_heads
    sc = x
    xn = ln(x, ln1_s[0], ln1_b[0])
    q = (xn @ wq).reshape(B, T, num_heads, hd).transpose(0, 2, 1, 3)
    k = (xn @ wk).reshape(B, T, num_heads, hd).transpose(0, 2, 1, 3)
    v = (xn @ wv).reshape(B, T, num_heads, hd).transpose(0, 2, 1, 3)
    scores = jnp.einsum('bhqd,bhkd->bhqk', q, k)
    mask = jnp.triu(jnp.ones((T, T), bool), k=1)
    scores = jnp.where(mask, -jnp.inf, scores) / math.sqrt(hd)
    p = jax.nn.softmax(scores, axis=-1)
    ctx = jnp.einsum('bhqk,bhkd->bhqd', p, v).transpose(0, 2, 1, 3).reshape(B, T, D)
    x1 = ctx @ wo + bo[0] + sc
    xn2 = ln(x1, ln2_s[0], ln2_b[0])
    h = gelu(xn2 @ w1 + b1[0])
    return h @ w2 + b2[0] + x1


if __name__ == "__main__":
    # cfg: emb_dim=32, context_length=8, num_heads=4, drop_rate=0.0, qkv_bias=False
    B, T, D, H = 2, 8, 32, 4
    H4 = 4 * D

    key = jax.random.PRNGKey(0)
    ks = jax.random.split(key, 10)
    scale = 0.02
    wq = jax.random.normal(ks[0], (D, D), jnp.float32) * scale
    wk = jax.random.normal(ks[1], (D, D), jnp.float32) * scale
    wv = jax.random.normal(ks[2], (D, D), jnp.float32) * scale
    wo = jax.random.normal(ks[3], (D, D), jnp.float32) * scale
    bo = jax.random.normal(ks[4], (1, D), jnp.float32) * scale
    ln1_s = jnp.ones((1, D), jnp.float32)
    ln1_b = jnp.zeros((1, D), jnp.float32)
    ln2_s = jnp.ones((1, D), jnp.float32)
    ln2_b = jnp.zeros((1, D), jnp.float32)
    w1 = jax.random.normal(ks[5], (D, H4), jnp.float32) * scale
    b1 = jax.random.normal(ks[6], (1, H4), jnp.float32) * scale
    w2 = jax.random.normal(ks[7], (H4, D), jnp.float32) * scale
    b2 = jax.random.normal(ks[8], (1, D), jnp.float32) * scale

    params = (wq, wk, wv, wo, bo, ln1_s, ln1_b, ln2_s, ln2_b, w1, b1, w2, b2)

    x = jax.random.normal(ks[9], (B, T, D), jnp.float32)

    out = transformer_block(x, params, num_heads=H)
    out = jax.block_until_ready(out)

    ref = reference_block(x, params, num_heads=H)
    assert out.shape == (B, T, D)
    # bf16 matmul operands + approx softmax reciprocal vs. pure-f32 reference.
    assert jnp.allclose(out, ref, rtol=5e-3, atol=5e-3), "mismatch vs JAX reference"

    print("KERNEL_OK")
</pallas_src>

<mosaic_0001>
module attributes {stable_mosaic.version = 11 : i64} {
  func.func @transformer_block_kernel(%arg0: i32, %arg1: memref<1x8x32xf32, #tpu.memory_space<vmem>>, %arg2: memref<32x96xbf16, #tpu.memory_space<vmem>>, %arg3: memref<32x32xbf16, #tpu.memory_space<vmem>>, %arg4: memref<1x32xf32, #tpu.memory_space<vmem>>, %arg5: memref<1x32xf32, #tpu.memory_space<vmem>>, %arg6: memref<1x32xf32, #tpu.memory_space<vmem>>, %arg7: memref<1x32xf32, #tpu.memory_space<vmem>>, %arg8: memref<1x32xf32, #tpu.memory_space<vmem>>, %arg9: memref<32x128xbf16, #tpu.memory_space<vmem>>, %arg10: memref<1x128xf32, #tpu.memory_space<vmem>>, %arg11: memref<128x32xbf16, #tpu.memory_space<vmem>>, %arg12: memref<1x32xf32, #tpu.memory_space<vmem>>, %arg13: memref<1x8x32xf32, #tpu.memory_space<vmem>>) attributes {dimension_semantics = [#tpu.dimension_semantics<parallel>], iteration_bounds = array<i64: 2>, scalar_prefetch = 0 : i64, scratch_operands = 0 : i64, tpu.core_type = #tpu.core_type<tc>, window_params = [{transform_indices = @transform_0, window_bounds = array<i64: 1, 8, 32>}, {pipeline_mode = #tpu.pipeline_mode<synchronous>, transform_indices = @transform_1, window_bounds = array<i64: 32, 96>}, {pipeline_mode = #tpu.pipeline_mode<synchronous>, transform_indices = @transform_2, window_bounds = array<i64: 32, 32>}, {pipeline_mode = #tpu.pipeline_mode<synchronous>, transform_indices = @transform_3, window_bounds = array<i64: 1, 32>}, {pipeline_mode = #tpu.pipeline_mode<synchronous>, transform_indices = @transform_4, window_bounds = array<i64: 1, 32>}, {pipeline_mode = #tpu.pipeline_mode<synchronous>, transform_indices = @transform_5, window_bounds = array<i64: 1, 32>}, {pipeline_mode = #tpu.pipeline_mode<synchronous>, transform_indices = @transform_6, window_bounds = array<i64: 1, 32>}, {pipeline_mode = #tpu.pipeline_mode<synchronous>, transform_indices = @transform_7, window_bounds = array<i64: 1, 32>}, {pipeline_mode = #tpu.pipeline_mode<synchronous>, transform_indices = @transform_8, window_bounds = array<i64: 32, 128>}, {pipeline_mode = #tpu.pipeline_mode<synchronous>, transform_indices = @transform_9, window_bounds = array<i64: 1, 128>}, {pipeline_mode = #tpu.pipeline_mode<synchronous>, transform_indices = @transform_10, window_bounds = array<i64: 128, 32>}, {pipeline_mode = #tpu.pipeline_mode<synchronous>, transform_indices = @transform_11, window_bounds = array<i64: 1, 32>}, {transform_indices = @transform_12, window_bounds = array<i64: 1, 8, 32>}]} {
    %c0 = arith.constant 0 : index
    %c0_0 = arith.constant 0 : index
    %c0_1 = arith.constant 0 : index
    %0 = vector.load %arg1[%c0, %c0_0, %c0_1] : memref<1x8x32xf32, #tpu.memory_space<vmem>>, vector<1x8x32xf32>
    %1 = vector.shape_cast %0 : vector<1x8x32xf32> to vector<8x32xf32>
    %c0_2 = arith.constant 0 : index
    %c0_3 = arith.constant 0 : index
    %2 = vector.load %arg5[%c0_2, %c0_3] : memref<1x32xf32, #tpu.memory_space<vmem>>, vector<1x32xf32>
    %3 = vector.shape_cast %2 : vector<1x32xf32> to vector<32xf32>
    %c0_4 = arith.constant 0 : index
    %c0_5 = arith.constant 0 : index
    %4 = vector.load %arg6[%c0_4, %c0_5] : memref<1x32xf32, #tpu.memory_space<vmem>>, vector<1x32xf32>
    %5 = vector.shape_cast %4 : vector<1x32xf32> to vector<32xf32>
    %cst = arith.constant dense<0.000000e+00> : vector<8xf32>
    %6 = vector.multi_reduction <add>, %1, %cst [1] : vector<8x32xf32> to vector<8xf32>
    %7 = vector.shape_cast %6 : vector<8xf32> to vector<8x1xf32>
    %cst_6 = arith.constant 3.200000e+01 : f32
    %8 = vector.broadcast %cst_6 : f32 to vector<8x1xf32>
    %9 = arith.divf %7, %8 : vector<8x1xf32>
    %10 = vector.broadcast %9 : vector<8x1xf32> to vector<8x32xf32>
    %11 = arith.subf %1, %10 : vector<8x32xf32>
    %12 = arith.mulf %11, %11 : vector<8x32xf32>
    %cst_7 = arith.constant dense<0.000000e+00> : vector<8xf32>
    %13 = vector.multi_reduction <add>, %12, %cst_7 [1] : vector<8x32xf32> to vector<8xf32>
    %14 = vector.shape_cast %13 : vector<8xf32> to vector<8x1xf32>
    %cst_8 = arith.constant 3.200000e+01 : f32
    %15 = vector.broadcast %cst_8 : f32 to vector<8x1xf32>
    %16 = arith.divf %14, %15 : vector<8x1xf32>
    %17 = vector.broadcast %9 : vector<8x1xf32> to vector<8x32xf32>
    %18 = arith.subf %1, %17 : vector<8x32xf32>
    %19 = vector.shape_cast %3 : vector<32xf32> to vector<1x32xf32>
    %20 = vector.broadcast %19 : vector<1x32xf32> to vector<8x32xf32>
    %21 = arith.mulf %20, %18 : vector<8x32xf32>
    %cst_9 = arith.constant 9.99999974E-6 : f32
    %22 = vector.broadcast %cst_9 : f32 to vector<8x1xf32>
    %23 = arith.addf %16, %22 : vector<8x1xf32>
    %24 = math.rsqrt %23 : vector<8x1xf32>
    %25 = vector.broadcast %24 : vector<8x1xf32> to vector<8x32xf32>
    %26 = arith.mulf %21, %25 : vector<8x32xf32>
    %27 = vector.shape_cast %5 : vector<32xf32> to vector<1x32xf32>
    %28 = vector.broadcast %27 : vector<1x32xf32> to vector<8x32xf32>
    %29 = arith.addf %26, %28 : vector<8x32xf32>
    %30 = arith.truncf %29 : vector<8x32xf32> to vector<8x32xbf16>
    %c0_10 = arith.constant 0 : index
    %c0_11 = arith.constant 0 : index
    %31 = vector.load %arg2[%c0_10, %c0_11] : memref<32x96xbf16, #tpu.memory_space<vmem>>, vector<32x96xbf16>
    %cst_12 = arith.constant dense<0.000000e+00> : vector<8x96xf32>
    %32 = tpu.matmul %30, %31, %cst_12 {dimension_numbers = #tpu.dot_dimension_numbers<[1], [0], [0], [1], [0, 0, 1, 1], [], []>} : vector<8x32xbf16>, vector<32x96xbf16>, vector<8x96xf32> -> vector<8x96xf32>
    %33 = vector.extract_strided_slice %32 {offsets = [0, 0], sizes = [8, 32], strides = [1, 1]} : vector<8x96xf32> to vector<8x32xf32>
    %cst_13 = arith.constant 0.353553385 : f32
    %34 = vector.broadcast %cst_13 : f32 to vector<8x32xf32>
    %35 = arith.mulf %33, %34 : vector<8x32xf32>
    %36 = vector.extract_strided_slice %32 {offsets = [0, 32], sizes = [8, 32], strides = [1, 1]} : vector<8x96xf32> to vector<8x32xf32>
    %37 = vector.extract_strided_slice %32 {offsets = [0, 64], sizes = [8, 32], strides = [1, 1]} : vector<8x96xf32> to vector<8x32xf32>
    %38 = tpu.iota {dimensions = array<i32: 0>} : vector<8x8xi32>
    %39 = tpu.iota {dimensions = array<i32: 1>} : vector<8x8xi32>
    %40 = arith.cmpi sgt, %39, %38 : vector<8x8xi32>
    %41 = vector.extract_strided_slice %35 {offsets = [0, 0], sizes = [8, 8], strides = [1, 1]} : vector<8x32xf32> to vector<8x8xf32>
    %42 = arith.truncf %41 : vector<8x8xf32> to vector<8x8xbf16>
    %43 = vector.extract_strided_slice %36 {offsets = [0, 0], sizes = [8, 8], strides = [1, 1]} : vector<8x32xf32> to vector<8x8xf32>
    %44 = arith.truncf %43 : vector<8x8xf32> to vector<8x8xbf16>
    %45 = vector.extract_strided_slice %37 {offsets = [0, 0], sizes = [8, 8], strides = [1, 1]} : vector<8x32xf32> to vector<8x8xf32>
    %46 = arith.truncf %45 : vector<8x8xf32> to vector<8x8xbf16>
    %cst_14 = arith.constant dense<0.000000e+00> : vector<8x8xf32>
    %47 = tpu.matmul %42, %44, %cst_14 {dimension_numbers = #tpu.dot_dimension_numbers<[1], [1], [0], [0], [0, 0, 1, 0], [], []>} : vector<8x8xbf16>, vector<8x8xbf16>, vector<8x8xf32> -> vector<8x8xf32>
    %cst_15 = arith.constant -1.000000e+30 : f32
    %48 = vector.broadcast %cst_15 : f32 to vector<8x8xf32>
    %49 = arith.select %40, %48, %47 : vector<8x8xi1>, vector<8x8xf32>
    %cst_16 = arith.constant dense<0xFF800000> : vector<8xf32>
    %50 = vector.multi_reduction <maximumf>, %49, %cst_16 [1] : vector<8x8xf32> to vector<8xf32>
    %51 = vector.shape_cast %50 : vector<8xf32> to vector<8x1xf32>
    %52 = vector.broadcast %51 : vector<8x1xf32> to vector<8x8xf32>
    %53 = arith.subf %49, %52 : vector<8x8xf32>
    %54 = math.exp %53 : vector<8x8xf32>
    %cst_17 = arith.constant dense<0.000000e+00> : vector<8xf32>
    %55 = vector.multi_reduction <add>, %54, %cst_17 [1] : vector<8x8xf32> to vector<8xf32>
    %56 = vector.shape_cast %55 : vector<8xf32> to vector<8x1xf32>
    %57 = tpu.reciprocal %56 {approx = true} : vector<8x1xf32> -> vector<8x1xf32>
    %58 = vector.broadcast %57 : vector<8x1xf32> to vector<8x8xf32>
    %59 = arith.mulf %54, %58 : vector<8x8xf32>
    %60 = arith.truncf %59 : vector<8x8xf32> to vector<8x8xbf16>
    %cst_18 = arith.constant dense<0.000000e+00> : vector<8x8xf32>
    %61 = tpu.matmul %60, %46, %cst_18 {dimension_numbers = #tpu.dot_dimension_numbers<[1], [0], [0], [1], [0, 0, 1, 1], [], []>} : vector<8x8xbf16>, vector<8x8xbf16>, vector<8x8xf32> -> vector<8x8xf32>
    %62 = vector.extract_strided_slice %35 {offsets = [0, 8], sizes = [8, 8], strides = [1, 1]} : vector<8x32xf32> to vector<8x8xf32>
    %63 = arith.truncf %62 : vector<8x8xf32> to vector<8x8xbf16>
    %64 = vector.extract_strided_slice %36 {offsets = [0, 8], sizes = [8, 8], strides = [1, 1]} : vector<8x32xf32> to vector<8x8xf32>
    %65 = arith.truncf %64 : vector<8x8xf32> to vector<8x8xbf16>
    %66 = vector.extract_strided_slice %37 {offsets = [0, 8], sizes = [8, 8], strides = [1, 1]} : vector<8x32xf32> to vector<8x8xf32>
    %67 = arith.truncf %66 : vector<8x8xf32> to vector<8x8xbf16>
    %cst_19 = arith.constant dense<0.000000e+00> : vector<8x8xf32>
    %68 = tpu.matmul %63, %65, %cst_19 {dimension_numbers = #tpu.dot_dimension_numbers<[1], [1], [0], [0], [0, 0, 1, 0], [], []>} : vector<8x8xbf16>, vector<8x8xbf16>, vector<8x8xf32> -> vector<8x8xf32>
    %cst_20 = arith.constant -1.000000e+30 : f32
    %69 = vector.broadcast %cst_20 : f32 to vector<8x8xf32>
    %70 = arith.select %40, %69, %68 : vector<8x8xi1>, vector<8x8xf32>
    %cst_21 = arith.constant dense<0xFF800000> : vector<8xf32>
    %71 = vector.multi_reduction <maximumf>, %70, %cst_21 [1] : vector<8x8xf32> to vector<8xf32>
    %72 = vector.shape_cast %71 : vector<8xf32> to vector<8x1xf32>
    %73 = vector.broadcast %72 : vector<8x1xf32> to vector<8x8xf32>
    %74 = arith.subf %70, %73 : vector<8x8xf32>
    %75 = math.exp %74 : vector<8x8xf32>
    %cst_22 = arith.constant dense<0.000000e+00> : vector<8xf32>
    %76 = vector.multi_reduction <add>, %75, %cst_22 [1] : vector<8x8xf32> to vector<8xf32>
    %77 = vector.shape_cast %76 : vector<8xf32> to vector<8x1xf32>
    %78 = tpu.reciprocal %77 {approx = true} : vector<8x1xf32> -> vector<8x1xf32>
    %79 = vector.broadcast %78 : vector<8x1xf32> to vector<8x8xf32>
    %80 = arith.mulf %75, %79 : vector<8x8xf32>
    %81 = arith.truncf %80 : vector<8x8xf32> to vector<8x8xbf16>
    %cst_23 = arith.constant dense<0.000000e+00> : vector<8x8xf32>
    %82 = tpu.matmul %81, %67, %cst_23 {dimension_numbers = #tpu.dot_dimension_numbers<[1], [0], [0], [1], [0, 0, 1, 1], [], []>} : vector<8x8xbf16>, vector<8x8xbf16>, vector<8x8xf32> -> vector<8x8xf32>
    %83 = vector.extract_strided_slice %35 {offsets = [0, 16], sizes = [8, 8], strides = [1, 1]} : vector<8x32xf32> to vector<8x8xf32>
    %84 = arith.truncf %83 : vector<8x8xf32> to vector<8x8xbf16>
    %85 = vector.extract_strided_slice %36 {offsets = [0, 16], sizes = [8, 8], strides = [1, 1]} : vector<8x32xf32> to vector<8x8xf32>
    %86 = arith.truncf %85 : vector<8x8xf32> to vector<8x8xbf16>
    %87 = vector.extract_strided_slice %37 {offsets = [0, 16], sizes = [8, 8], strides = [1, 1]} : vector<8x32xf32> to vector<8x8xf32>
    %88 = arith.truncf %87 : vector<8x8xf32> to vector<8x8xbf16>
    %cst_24 = arith.constant dense<0.000000e+00> : vector<8x8xf32>
    %89 = tpu.matmul %84, %86, %cst_24 {dimension_numbers = #tpu.dot_dimension_numbers<[1], [1], [0], [0], [0, 0, 1, 0], [], []>} : vector<8x8xbf16>, vector<8x8xbf16>, vector<8x8xf32> -> vector<8x8xf32>
    %cst_25 = arith.constant -1.000000e+30 : f32
    %90 = vector.broadcast %cst_25 : f32 to vector<8x8xf32>
    %91 = arith.select %40, %90, %89 : vector<8x8xi1>, vector<8x8xf32>
    %cst_26 = arith.constant dense<0xFF800000> : vector<8xf32>
    %92 = vector.multi_reduction <maximumf>, %91, %cst_26 [1] : vector<8x8xf32> to vector<8xf32>
    %93 = vector.shape_cast %92 : vector<8xf32> to vector<8x1xf32>
    %94 = vector.broadcast %93 : vector<8x1xf32> to vector<8x8xf32>
    %95 = arith.subf %91, %94 : vector<8x8xf32>
    %96 = math.exp %95 : vector<8x8xf32>
    %cst_27 = arith.constant dense<0.000000e+00> : vector<8xf32>
    %97 = vector.multi_reduction <add>, %96, %cst_27 [1] : vector<8x8xf32> to vector<8xf32>
    %98 = vector.shape_cast %97 : vector<8xf32> to vector<8x1xf32>
    %99 = tpu.reciprocal %98 {approx = true} : vector<8x1xf32> -> vector<8x1xf32>
    %100 = vector.broadcast %99 : vector<8x1xf32> to vector<8x8xf32>
    %101 = arith.mulf %96, %100 : vector<8x8xf32>
    %102 = arith.truncf %101 : vector<8x8xf32> to vector<8x8xbf16>
    %cst_28 = arith.constant dense<0.000000e+00> : vector<8x8xf32>
    %103 = tpu.matmul %102, %88, %cst_28 {dimension_numbers = #tpu.dot_dimension_numbers<[1], [0], [0], [1], [0, 0, 1, 1], [], []>} : vector<8x8xbf16>, vector<8x8xbf16>, vector<8x8xf32> -> vector<8x8xf32>
    %104 = vector.extract_strided_slice %35 {offsets = [0, 24], sizes = [8, 8], strides = [1, 1]} : vector<8x32xf32> to vector<8x8xf32>
    %105 = arith.truncf %104 : vector<8x8xf32> to vector<8x8xbf16>
    %106 = vector.extract_strided_slice %36 {offsets = [0, 24], sizes = [8, 8], strides = [1, 1]} : vector<8x32xf32> to vector<8x8xf32>
    %107 = arith.truncf %106 : vector<8x8xf32> to vector<8x8xbf16>
    %108 = vector.extract_strided_slice %37 {offsets = [0, 24], sizes = [8, 8], strides = [1, 1]} : vector<8x32xf32> to vector<8x8xf32>
    %109 = arith.truncf %108 : vector<8x8xf32> to vector<8x8xbf16>
    %cst_29 = arith.constant dense<0.000000e+00> : vector<8x8xf32>
    %110 = tpu.matmul %105, %107, %cst_29 {dimension_numbers = #tpu.dot_dimension_numbers<[1], [1], [0], [0], [0, 0, 1, 0], [], []>} : vector<8x8xbf16>, vector<8x8xbf16>, vector<8x8xf32> -> vector<8x8xf32>
    %cst_30 = arith.constant -1.000000e+30 : f32
    %111 = vector.broadcast %cst_30 : f32 to vector<8x8xf32>
    %112 = arith.select %40, %111, %110 : vector<8x8xi1>, vector<8x8xf32>
    %cst_31 = arith.constant dense<0xFF800000> : vector<8xf32>
    %113 = vector.multi_reduction <maximumf>, %112, %cst_31 [1] : vector<8x8xf32> to vector<8xf32>
    %114 = vector.shape_cast %113 : vector<8xf32> to vector<8x1xf32>
    %115 = vector.broadcast %114 : vector<8x1xf32> to vector<8x8xf32>
    %116 = arith.subf %112, %115 : vector<8x8xf32>
    %117 = math.exp %116 : vector<8x8xf32>
    %cst_32 = arith.constant dense<0.000000e+00> : vector<8xf32>
    %118 = vector.multi_reduction <add>, %117, %cst_32 [1] : vector<8x8xf32> to vector<8xf32>
    %119 = vector.shape_cast %118 : vector<8xf32> to vector<8x1xf32>
    %120 = tpu.reciprocal %119 {approx = true} : vector<8x1xf32> -> vector<8x1xf32>
    %121 = vector.broadcast %120 : vector<8x1xf32> to vector<8x8xf32>
    %122 = arith.mulf %117, %121 : vector<8x8xf32>
    %123 = arith.truncf %122 : vector<8x8xf32> to vector<8x8xbf16>
    %cst_33 = arith.constant dense<0.000000e+00> : vector<8x8xf32>
    %124 = tpu.matmul %123, %109, %cst_33 {dimension_numbers = #tpu.dot_dimension_numbers<[1], [0], [0], [1], [0, 0, 1, 1], [], []>} : vector<8x8xbf16>, vector<8x8xbf16>, vector<8x8xf32> -> vector<8x8xf32>
    %125 = tpu.concatenate %61, %82, %103, %124 in 1 : vector<8x8xf32>, vector<8x8xf32>, vector<8x8xf32>, vector<8x8xf32> -> vector<8x32xf32>
    %126 = arith.truncf %125 : vector<8x32xf32> to vector<8x32xbf16>
    %c0_34 = arith.constant 0 : index
    %c0_35 = arith.constant 0 : index
    %127 = vector.load %arg3[%c0_34, %c0_35] : memref<32x32xbf16, #tpu.memory_space<vmem>>, vector<32x32xbf16>
    %cst_36 = arith.constant dense<0.000000e+00> : vector<8x32xf32>
    %128 = tpu.matmul %126, %127, %cst_36 {dimension_numbers = #tpu.dot_dimension_numbers<[1], [0], [0], [1], [0, 0, 1, 1], [], []>} : vector<8x32xbf16>, vector<32x32xbf16>, vector<8x32xf32> -> vector<8x32xf32>
    %c0_37 = arith.constant 0 : index
    %c0_38 = arith.constant 0 : index
    %129 = vector.load %arg4[%c0_37, %c0_38] : memref<1x32xf32, #tpu.memory_space<vmem>>, vector<1x32xf32>
    %130 = vector.shape_cast %129 : vector<1x32xf32> to vector<32xf32>
    %131 = vector.shape_cast %130 : vector<32xf32> to vector<1x32xf32>
    %132 = vector.broadcast %131 : vector<1x32xf32> to vector<8x32xf32>
    %133 = arith.addf %128, %132 : vector<8x32xf32>
    %134 = arith.addf %133, %1 : vector<8x32xf32>
    %c0_39 = arith.constant 0 : index
    %c0_40 = arith.constant 0 : index
    %135 = vector.load %arg7[%c0_39, %c0_40] : memref<1x32xf32, #tpu.memory_space<vmem>>, vector<1x32xf32>
    %136 = vector.shape_cast %135 : vector<1x32xf32> to vector<32xf32>
    %c0_41 = arith.constant 0 : index
    %c0_42 = arith.constant 0 : index
    %137 = vector.load %arg8[%c0_41, %c0_42] : memref<1x32xf32, #tpu.memory_space<vmem>>, vector<1x32xf32>
    %138 = vector.shape_cast %137 : vector<1x32xf32> to vector<32xf32>
    %cst_43 = arith.constant dense<0.000000e+00> : vector<8xf32>
    %139 = vector.multi_reduction <add>, %134, %cst_43 [1] : vector<8x32xf32> to vector<8xf32>
    %140 = vector.shape_cast %139 : vector<8xf32> to vector<8x1xf32>
    %cst_44 = arith.constant 3.200000e+01 : f32
    %141 = vector.broadcast %cst_44 : f32 to vector<8x1xf32>
    %142 = arith.divf %140, %141 : vector<8x1xf32>
    %143 = vector.broadcast %142 : vector<8x1xf32> to vector<8x32xf32>
    %144 = arith.subf %134, %143 : vector<8x32xf32>
    %145 = arith.mulf %144, %144 : vector<8x32xf32>
    %cst_45 = arith.constant dense<0.000000e+00> : vector<8xf32>
    %146 = vector.multi_reduction <add>, %145, %cst_45 [1] : vector<8x32xf32> to vector<8xf32>
    %147 = vector.shape_cast %146 : vector<8xf32> to vector<8x1xf32>
    %cst_46 = arith.constant 3.200000e+01 : f32
    %148 = vector.broadcast %cst_46 : f32 to vector<8x1xf32>
    %149 = arith.divf %147, %148 : vector<8x1xf32>
    %150 = vector.broadcast %142 : vector<8x1xf32> to vector<8x32xf32>
    %151 = arith.subf %134, %150 : vector<8x32xf32>
    %152 = vector.shape_cast %136 : vector<32xf32> to vector<1x32xf32>
    %153 = vector.broadcast %152 : vector<1x32xf32> to vector<8x32xf32>
    %154 = arith.mulf %153, %151 : vector<8x32xf32>
    %cst_47 = arith.constant 9.99999974E-6 : f32
    %155 = vector.broadcast %cst_47 : f32 to vector<8x1xf32>
    %156 = arith.addf %149, %155 : vector<8x1xf32>
    %157 = math.rsqrt %156 : vector<8x1xf32>
    %158 = vector.broadcast %157 : vector<8x1xf32> to vector<8x32xf32>
    %159 = arith.mulf %154, %158 : vector<8x32xf32>
    %160 = vector.shape_cast %138 : vector<32xf32> to vector<1x32xf32>
    %161 = vector.broadcast %160 : vector<1x32xf32> to vector<8x32xf32>
    %162 = arith.addf %159, %161 : vector<8x32xf32>
    %163 = arith.truncf %162 : vector<8x32xf32> to vector<8x32xbf16>
    %c0_48 = arith.constant 0 : index
    %c0_49 = arith.constant 0 : index
    %164 = vector.load %arg9[%c0_48, %c0_49] : memref<32x128xbf16, #tpu.memory_space<vmem>>, vector<32x128xbf16>
    %cst_50 = arith.constant dense<0.000000e+00> : vector<8x128xf32>
    %165 = tpu.matmul %163, %164, %cst_50 {dimension_numbers = #tpu.dot_dimension_numbers<[1], [0], [0], [1], [0, 0, 1, 1], [], []>} : vector<8x32xbf16>, vector<32x128xbf16>, vector<8x128xf32> -> vector<8x128xf32>
    %c0_51 = arith.constant 0 : index
    %c0_52 = arith.constant 0 : index
    %166 = vector.load %arg10[%c0_51, %c0_52] : memref<1x128xf32, #tpu.memory_space<vmem>>, vector<1x128xf32>
    %167 = vector.shape_cast %166 : vector<1x128xf32> to vector<128xf32>
    %168 = vector.shape_cast %167 : vector<128xf32> to vector<1x128xf32>
    %169 = vector.broadcast %168 : vector<1x128xf32> to vector<8x128xf32>
    %170 = arith.addf %165, %169 : vector<8x128xf32>
    %cst_53 = arith.constant 5.000000e-01 : f32
    %171 = vector.broadcast %cst_53 : f32 to vector<8x128xf32>
    %172 = arith.mulf %171, %170 : vector<8x128xf32>
    %173 = arith.mulf %170, %170 : vector<8x128xf32>
    %174 = arith.mulf %170, %173 : vector<8x128xf32>
    %cst_54 = arith.constant 4.471500e-02 : f32
    %175 = vector.broadcast %cst_54 : f32 to vector<8x128xf32>
    %176 = arith.mulf %175, %174 : vector<8x128xf32>
    %177 = arith.addf %170, %176 : vector<8x128xf32>
    %cst_55 = arith.constant 0.797884583 : f32
    %178 = vector.broadcast %cst_55 : f32 to vector<8x128xf32>
    %179 = arith.mulf %178, %177 : vector<8x128xf32>
    %180 = math.tanh %179 : vector<8x128xf32>
    %cst_56 = arith.constant 1.000000e+00 : f32
    %181 = vector.broadcast %cst_56 : f32 to vector<8x128xf32>
    %182 = arith.addf %181, %180 : vector<8x128xf32>
    %183 = arith.mulf %172, %182 : vector<8x128xf32>
    %184 = arith.truncf %183 : vector<8x128xf32> to vector<8x128xbf16>
    %c0_57 = arith.constant 0 : index
    %c0_58 = arith.constant 0 : index
    %185 = vector.load %arg11[%c0_57, %c0_58] : memref<128x32xbf16, #tpu.memory_space<vmem>>, vector<128x32xbf16>
    %cst_59 = arith.constant dense<0.000000e+00> : vector<8x32xf32>
    %186 = tpu.matmul %184, %185, %cst_59 {dimension_numbers = #tpu.dot_dimension_numbers<[1], [0], [0], [1], [0, 0, 1, 1], [], []>} : vector<8x128xbf16>, vector<128x32xbf16>, vector<8x32xf32> -> vector<8x32xf32>
    %c0_60 = arith.constant 0 : index
    %c0_61 = arith.constant 0 : index
    %187 = vector.load %arg12[%c0_60, %c0_61] : memref<1x32xf32, #tpu.memory_space<vmem>>, vector<1x32xf32>
    %188 = vector.shape_cast %187 : vector<1x32xf32> to vector<32xf32>
    %189 = vector.shape_cast %188 : vector<32xf32> to vector<1x32xf32>
    %190 = vector.broadcast %189 : vector<1x32xf32> to vector<8x32xf32>
    %191 = arith.addf %186, %190 : vector<8x32xf32>
    %192 = arith.addf %191, %134 : vector<8x32xf32>
    %193 = vector.shape_cast %192 : vector<8x32xf32> to vector<1x8x32xf32>
    %c0_62 = arith.constant 0 : index
    %c0_63 = arith.constant 0 : index
    %c0_64 = arith.constant 0 : index
    %194 = vector.load %arg13[%c0_62, %c0_63, %c0_64] : memref<1x8x32xf32, #tpu.memory_space<vmem>>, vector<1x8x32xf32>
    tpu.vector_store %arg13[%c0_62, %c0_63, %c0_64], %193 {strides = array<i32>} : memref<1x8x32xf32, #tpu.memory_space<vmem>>, vector<1x8x32xf32>,
    return
  }
  func.func @transform_0(%arg0: i32) -> (i32, i32, i32) {
    %c0_i32 = arith.constant 0 : i32
    %c0_i32_0 = arith.constant 0 : i32
    %c0_i32_1 = arith.constant 0 : i32
    return %arg0, %c0_i32, %c0_i32_0 : i32, i32, i32
  }
  func.func @transform_1(%arg0: i32) -> (i32, i32) {
    %c0_i32 = arith.constant 0 : i32
    %c0_i32_0 = arith.constant 0 : i32
    %c0_i32_1 = arith.constant 0 : i32
    return %c0_i32, %c0_i32_0 : i32, i32
  }
  func.func @transform_2(%arg0: i32) -> (i32, i32) {
    %c0_i32 = arith.constant 0 : i32
    %c0_i32_0 = arith.constant 0 : i32
    %c0_i32_1 = arith.constant 0 : i32
    return %c0_i32, %c0_i32_0 : i32, i32
  }
  func.func @transform_3(%arg0: i32) -> (i32, i32) {
    %c0_i32 = arith.constant 0 : i32
    %c0_i32_0 = arith.constant 0 : i32
    %c0_i32_1 = arith.constant 0 : i32
    return %c0_i32, %c0_i32_0 : i32, i32
  }
  func.func @transform_4(%arg0: i32) -> (i32, i32) {
    %c0_i32 = arith.constant 0 : i32
    %c0_i32_0 = arith.constant 0 : i32
    %c0_i32_1 = arith.constant 0 : i32
    return %c0_i32, %c0_i32_0 : i32, i32
  }
  func.func @transform_5(%arg0: i32) -> (i32, i32) {
    %c0_i32 = arith.constant 0 : i32
    %c0_i32_0 = arith.constant 0 : i32
    %c0_i32_1 = arith.constant 0 : i32
    return %c0_i32, %c0_i32_0 : i32, i32
  }
  func.func @transform_6(%arg0: i32) -> (i32, i32) {
    %c0_i32 = arith.constant 0 : i32
    %c0_i32_0 = arith.constant 0 : i32
    %c0_i32_1 = arith.constant 0 : i32
    return %c0_i32, %c0_i32_0 : i32, i32
  }
  func.func @transform_7(%arg0: i32) -> (i32, i32) {
    %c0_i32 = arith.constant 0 : i32
    %c0_i32_0 = arith.constant 0 : i32
    %c0_i32_1 = arith.constant 0 : i32
    return %c0_i32, %c0_i32_0 : i32, i32
  }
  func.func @transform_8(%arg0: i32) -> (i32, i32) {
    %c0_i32 = arith.constant 0 : i32
    %c0_i32_0 = arith.constant 0 : i32
    %c0_i32_1 = arith.constant 0 : i32
    return %c0_i32, %c0_i32_0 : i32, i32
  }
  func.func @transform_9(%arg0: i32) -> (i32, i32) {
    %c0_i32 = arith.constant 0 : i32
    %c0_i32_0 = arith.constant 0 : i32
    %c0_i32_1 = arith.constant 0 : i32
    return %c0_i32, %c0_i32_0 : i32, i32
  }
  func.func @transform_10(%arg0: i32) -> (i32, i32) {
    %c0_i32 = arith.constant 0 : i32
    %c0_i32_0 = arith.constant 0 : i32
    %c0_i32_1 = arith.constant 0 : i32
    return %c0_i32, %c0_i32_0 : i32, i32
  }
  func.func @transform_11(%arg0: i32) -> (i32, i32) {
    %c0_i32 = arith.constant 0 : i32
    %c0_i32_0 = arith.constant 0 : i32
    %c0_i32_1 = arith.constant 0 : i32
    return %c0_i32, %c0_i32_0 : i32, i32
  }
  func.func @transform_12(%arg0: i32) -> (i32, i32, i32) {
    %c0_i32 = arith.constant 0 : i32
    %c0_i32_0 = arith.constant 0 : i32
    %c0_i32_1 = arith.constant 0 : i32
    return %arg0, %c0_i32, %c0_i32_0 : i32, i32, i32
  }
}

</mosaic_0001>

<bundles_post_ra>
// kernel: tpu_custom_call.1
= control target key start
LH: loop header
LB: loop body
LE: loop exit
PB: predicated region body
PF: predicated region fallthrough
CT: control target
= control target key end

     0   :  { %s1548_s0 = inlined_call_operand.vmem [shape: f32[2,8,32], index: 0, kind: input, shape index: {}]   ;;  %s1549_s1 = inlined_call_operand.vmem [shape: bf16[32,96], index: 1, kind: input, shape index: {}]   ;;  %s1550_s2 = inlined_call_operand.vmem [shape: bf16[32,32], index: 2, kind: input, shape index: {}]   ;;  %s1551_s3 = inlined_call_operand.vmem [shape: f32[1,32], index: 3, kind: input, shape index: {}]   ;;  %s1552_s4 = inlined_call_operand.vmem [shape: f32[1,32], index: 4, kind: input, shape index: {}]   ;;  %s1553_s5 = inlined_call_operand.vmem [shape: f32[1,32], index: 5, kind: input, shape index: {}]   ;;  %s1554_s6 = inlined_call_operand.vmem [shape: f32[1,32], index: 6, kind: input, shape index: {}]   ;;  %s1555_s7 = inlined_call_operand.vmem [shape: f32[1,32], index: 7, kind: input, shape index: {}]   ;;  %s1556_s8 = inlined_call_operand.vmem [shape: bf16[32,128], index: 8, kind: input, shape index: {}]   ;;  %s1557_s9 = inlined_call_operand.vmem [shape: f32[1,128], index: 9, kind: input, shape index: {}]   ;;  %s1558_s10 = inlined_call_operand.vmem [shape: bf16[128,32], index: 10, kind: input, shape index: {}]   ;;  %s1559_s11 = inlined_call_operand.vmem [shape: f32[1,32], index: 11, kind: input, shape index: {}]   ;;  %s1560_s12 = inlined_call_operand.hbm [shape: f32[2,8,32], index: 12, kind: output, shape index: {}]  }
   0x1   :  { %1561 = sst [smem:[#allocation5_spill]] %s1548_s0 }
   0x2   :  { %1562 = sst [smem:[#allocation6_spill]] %s1549_s1 }
   0x3   :  { %1563 = sst [smem:[#allocation7_spill]] %s1550_s2 }
   0x4   :  { %17 = vsyncpa [#allocation3], 0 }
   0x5   :  { %19 = vsyncpa [#allocation3 + $0x1], 0  ;;  %s1334_s21 = smov 0   ;;  %s1336_s22 = smov 0  }
   0x6   :  { %s1338_s23 = smov 0   ;;  %s1340_s24 = smov 0  }
   0x7 LB: > { %s1355_s25 = sadd.s32 4294967295, %s1252_s24   ;;  %s1014_s26 = sadd.s32 4294967294, %s1252_s24   ;;  %s1252_s24 = sphi %s1340_s24, %s1572_s24   ;;  %s1248_s23 = sphi %s1338_s23, %s1571_s23   ;;  %s1244_s22 = sphi %s1336_s22, %s1570_s22   ;;  %s1240_s21 = sphi %s1334_s21, %s1569_s21  }
   0x8   : > { %s1359_s27 = sadd.s32 1, %s1252_s24   ;;  %s289_s28 = sadd.s32 1, %s1248_s23 }
   0x9   : > { %s286_s29 = ssub.s32 %s1252_s24, %s1359_s27  ;;  %p299_p0 = scmp.ne.s32.totalorder %s1248_s23, %s1244_s22 }
   0xa   : > { %p287_p1 = scmp.eq.s32.totalorder %s286_s29, 0  ;;  %p300_p2 = scmp.eq.s32.totalorder %s1355_s25, 1 }
   0xb   : > { %p305_p3 = scmp.ne.s32.totalorder %s1244_s22, %s1240_s21  ;;  %p306_p4 = scmp.eq.s32.totalorder %s1014_s26, 1 }
   0xc   : > { %s1370_s30 = scalar_select %p287_p1, %s1248_s23, %s289_s28  }
   0xd   : > { %p1372_p5 = por %p300_p2, %p299_p0  ;;  %p1376_p6 = por %p306_p4, %p305_p3 }
   0xe   : > { %p1017_p7 = scmp.ge.s32.totalorder %s1252_s24, 1  ;;  %p364_p8 = scmp.lt.s32.totalorder %s1252_s24, 3 }
  0x10   : > { %p365_p9 = pnand %p1017_p7, %p364_p8 }
  0x11   : > { %p405_p10 = scmp.lt.s32.totalorder (!%p365_p9), %s1355_s25, 1  ;;  %s1566_s0 = sld [smem:[#allocation5_spill]] (!%p365_p9) }
  0x12   : > { %368 = sbr.rel (%p365_p9) target bundleno = 2318 (0x90e), region = 68  ;;  %s1567_s1 = sld [smem:[#allocation6_spill]] (!%p365_p9) }
  0x13   : > { %s1256_s20 = smov (!%p365_p9), 64   ;;  %s1257_s26 = smov (!%p365_p9), 96  }
  0x14   : > { %s1258_s28 = smov (!%p365_p9), 72   ;;  %s1259_s29 = smov (!%p365_p9), 80  }
  0x15   : > { %s1262_s17 = smov (!%p365_p9), 112   ;;  %s1263_s18 = smov (!%p365_p9), 40  }
  0x16   : > { %s1568_s2 = sld [smem:[#allocation7_spill]] (!%p365_p9) }
  0x17   : > { %s406_s15 = scalar_select %p405_p10, %s1355_s25, 1  ;;  %vm413_vm0 = vcmask 261120   ;;  %v1254_v2 = vmov 32.0   ;;  %v1159_v23 = vld [vmem:[%s1552_s4] ss:$0 sm:$0xff]  ;;  %vm533_vm5 = vcmask 1043456   ;;  %v485_v47 = vlaneseq }
  0x18   : > { %1166 = vrcp.f32 %v1254_v2  ;;  %v1092_v14 = vld [vmem:[%s1567_s1 + $0x8] sm:$0xff]  ;;  %v1091_v15 = vld [vmem:[%s1567_s1] sm:$0xff]  ;;  %vm495_vm6 = vcmask 64512   ;;  %vm735_vm8 = vcmask 130048   ;;  %vm737_vm9 = vcmask 195584  }
  0x19   : > { %s1019_s16 = sshll.u32 %s406_s15, 3  ;;  %477 = vmatpush.bf16.msra.mxu0 %v1092_v14  ;;  %v1160_v27 = vld [vmem:[%s1553_s5] ss:$0 sm:$0xff]  ;;  %v486_v48 = vshrl.u32 %v485_v47, 7  ;;  %v488_v49 = vand.u32 127, %v485_v47  ;;  %s1260_s15 = smov 120  }
  0x1a   : > { %s408_s19 = scalar_lea.vmem %s1566_s0, %s1019_s16  ;;  %s1261_s16 = smov 104  }
  0x1b   : > { %v1387_v0 = vld [vmem:[%s408_s19] sm:$0xff]  ;;  %s1255_s19 = smov 88   ;;  %vm489_vm7 = vcmp.gt.s32.totalorder %v488_v49, %v486_v48  ;;  %s402_s0 = sand.u32 1, %s1244_s22  }
  0x1c   : > { %v414_v1 = vsel %vm413_vm0, %v1387_v0, 0.0 }
  0x1d   : > { %415 = vadd.xlane.f32.xlu0 %v414_v1  ;;  %478 = vmatpush.bf16.msra.mxu0 %v1091_v15 }
  0x1e   : > { %v1167_v3 = vpop.eup %1166 }
  0x1f   : > { %v418_v4 = vmul.f32 32.0, %v1167_v3  ;;  %vm422_vm1 = vweird.f32 %v1167_v3 }
  0x21   : > { %v419_v5 = vsub.f32 1.0, %v418_v4 }
  0x23   : > { %v420_v6 = vmul.f32 %v1167_v3, %v419_v5 }
  0x25   : > { %v421_v7 = vadd.f32 %v1167_v3, %v420_v6 }
  0x27   : > { %v1391_v8 = vsel %vm422_vm1, %v1167_v3, %v421_v7 }
  0x90   : > { %v416_v9 = vpop.xlane.xlu0 %415 }
  0x91   : > { %v424_v10 = vmul.f32 %v1391_v8, %v416_v9 }
  0x93   : > { %v425_v11 = vsub.f32 %v1387_v0, %v424_v10 }
  0x95   : > { %v426_v12 = vmul.f32 %v425_v11, %v425_v11  ;;  %v434_v26 = vmul.f32 %v1159_v23, %v425_v11 }
  0x97   : > { %v427_v13 = vsel %vm413_vm0, %v426_v12, 0.0 }
  0x98   : > { %428 = vadd.xlane.f32.xlu0 %v427_v13 }
 0x10b   : > { %v429_v16 = vpop.xlane.xlu0 %428 }
 0x10c   : > { %v430_v17 = vmul.f32 %v429_v16, %v1391_v8 }
 0x10e   : > { %v435_v18 = vadd.f32 1e-05, %v430_v17 }
 0x110   : > { %1168 = vrsqrt.f32 %v435_v18  ;;  %vm442_vm3 = vweird.f32 %v435_v18 }
 0x116   : > { %v1169_v19 = vpop.eup %1168 }
 0x117   : > { %v437_v20 = vmul.f32 %v1169_v19, %v435_v18  ;;  %vm443_vm2 = vweird.f32 %v1169_v19 }
 0x118   : > { %vm444_vm4 = vmor %vm442_vm3, %vm443_vm2 }
 0x119   : > { %v438_v21 = vmul.f32 %v1169_v19, %v437_v20 }
 0x11b   : > { %v439_v22 = vmul.f32 0.5, %v438_v21 }
 0x11d   : > { %v440_v24 = vsub.f32 1.5, %v439_v22 }
 0x11f   : > { %v441_v25 = vmul.f32 %v1169_v19, %v440_v24 }
 0x121   : > { %v445_v28 = vsel %vm444_vm4, %v1169_v19, %v441_v25 }
 0x122   : > { %v446_v29 = vmul.f32 %v445_v28, %v434_v26 }
 0x124   : > { %v450_v30 = vadd.f32 %v1160_v27, %v446_v29 }
 0x126   : > { %v451_v31 = vpack.c.bf16 %v450_v30, %v450_v30 }
 0x128   : > { %1028 = vmatmul.msk.bf16.vlgmr.msra.gmra.mxu0 %vm413_vm0, %v451_v31 }
 0x1a5   : > { %v480_v32 = vpop.f32.mrf.mxu0 }
 0x1a6   : > { %v1410_v33 = vpack.c.bf16 %v480_v32, %v480_v32  ;;  %v484_v41 = vmul.f32 0.35355338, %v480_v32 }
 0x1a8   : > { %553 = vrot.lane.b32.xlu0 %v1410_v33, %s1255_s19  ;;  %528 = vrot.lane.b32.xlu2 %v1410_v33, %s1256_s20  ;;  %v490_v42 = vpack.c.bf16 %v484_v41, %v484_v41  ;;  %s1264_s19 = smov 48   ;;  %s1265_s20 = smov 56  }
 0x1a9   : > { %493 = vrot.lane.b32.xlu1 %v1410_v33, %s1257_s26  ;;  %s1266_s26 = smov 16  }
 0x1ad   : > { %v482_v34 = vpop.f32.mrf.mxu0 }
 0x1b0   : > { %667 = vrot.lane.b32.xlu0 %v1410_v33, %s1258_s28  ;;  %s1267_s28 = smov 8  }
 0x1b8   : > { %610 = vrot.lane.b32.xlu0 %v1410_v33, %s1259_s29  ;;  %s1268_s29 = smov 24  }
 0x202   : > { %v529_v35 = vpop.permute.xlu2 %528 }
 0x203   : > { %v535_v36 = vsel %vm533_vm5, %v529_v35, 0 }
 0x204   : > { %544 = vmatpush.bf16.msra.mxu2 %v535_v36 }
 0x21a   : > { %v554_v37 = vpop.permute.xlu0 %553 }
 0x21b   : > { %v494_v38 = vpop.permute.xlu1 %493  ;;  %v559_v39 = vsel %vm495_vm6, %v554_v37, 0 }
 0x21c   : > { %v500_v40 = vsel %vm495_vm6, %v494_v38, 0  ;;  %568 = vmatpush.bf16.xpose.msrb.mxu2 %v559_v39 }
 0x21d   : > { %509 = vmatpush.bf16.xpose.msra.mxu1 %v500_v40 }
 0x222   : > { %v668_v43 = vpop.permute.xlu0 %667 }
 0x223   : > { %v673_v44 = vsel %vm495_vm6, %v668_v43, 0 }
 0x224   : > { %1029 = vmatmul.msk.bf16.vlgmr.msra.gmra.mxu1 %vm495_vm6, %v490_v42  ;;  %682 = vmatpush.bf16.xpose.msra.mxu3 %v673_v44 }
 0x22a   : > { %v611_v45 = vpop.permute.xlu0 %610 }
 0x22b   : > { %v616_v46 = vsel %vm495_vm6, %v611_v45, 0 }
 0x22c   : > { %625 = vmatpush.bf16.xpose.msrb.mxu0 %v616_v46 }
 0x2a1   : > { %v511_v50 = vpop.f32.mrf.mxu1 }
 0x2a2   : > { %v515_v51 = vsel %vm489_vm7, -1e+30, %v511_v50 }
 0x2a3   : > { %v516_v52 = vsel %vm495_vm6, %v515_v51, -inf }
 0x2a4   : > { %517 = vmax.xlane.f32.xlu1 %v516_v52 }
 0x2a9   : > { %v513_v53 = vpop.f32.mrf.mxu1 }
 0x317   : > { %v518_v54 = vpop.xlane.xlu1 %517 }
 0x318   : > { %v519_v55 = vsub.f32 %v515_v51, %v518_v54 }
 0x31a   : > { %v520_v56 = vmul.f32 1.442695, %v519_v55 }
 0x31c   : > { %1170 = vpow2.f32 %v520_v56 }
 0x322   : > { %v1171_v57 = vpop.eup %1170 }
 0x323   : > { %v522_v58 = vsel %vm495_vm6, %v1171_v57, 0.0 }
 0x324   : > { %523 = vadd.xlane.f32.xlu2 %v522_v58  ;;  %v1093_v58 = vld [vmem:[%s1568_s2] sm:$0xff] }
 0x33c   : > { %551 = vrot.lane.b32.xlu2 %v490_v42, %s1260_s15 }
 0x344   : > { %665 = vrot.lane.b32.xlu2 %v490_v42, %s1261_s16 }
 0x34c   : > { %608 = vrot.lane.b32.xlu2 %v490_v42, %s1262_s17 }
 0x397   : > { %v524_v59 = vpop.xlane.xlu2 %523 }
 0x398   : > { %1172 = vrcp.f32 %v524_v59 }
 0x39e   : > { %v1173_v60 = vpop.eup %1172 }
 0x39f   : > { %v552_v61 = vpop.permute.xlu2 %551  ;;  %v526_v62 = vmul.f32 %v1173_v60, %v1171_v57  ;;  %v1094_v57 = vld [vmem:[%s1568_s2 + $0x8] sm:$0xff] }
 0x3a0   : > { %769 = vmatpush.bf16.msra.mxu0 %v1094_v57 }
 0x3a1   : > { %v527_v63 = vpack.c.bf16 %v526_v62, %v526_v62 }
 0x3a3   : > { %1030 = vmatmul.msk.bf16.vlgmr.msra.gmra.mxu2 %vm495_vm6, %v527_v63 }
 0x3a4   : > { %770 = vmatpush.bf16.msra.mxu0 %v1093_v58 }
 0x3a7   : > { %v666_v1 = vpop.permute.xlu2 %665 }
 0x3a8   : > { %1035 = vmatmul.msk.bf16.vlgmr.msra.gmra.mxu3 %vm495_vm6, %v666_v1 }
 0x3af   : > { %v609_v2 = vpop.permute.xlu2 %608 }
 0x3b0   : > { %1033 = vmatmul.msk.bf16.vlgmr.msrb.gmra.mxu0 %vm495_vm6, %v609_v2 }
 0x3b3   : > { %1031 = vmatmul.msk.bf16.vlgmr.msrb.gmra.mxu2 %vm495_vm6, %v552_v61 }
 0x426   : > { %v1430_v3 = vpop.f32.mrf.mxu2 }
 0x42b   : > { %v684_v4 = vpop.f32.mrf.mxu3 }
 0x42c   : > { %v688_v5 = vsel %vm489_vm7, -1e+30, %v684_v4  ;;  %v1161_v4 = vld [vmem:[%s1551_s3] ss:$0 sm:$0xff] }
 0x42d   : > { %v627_v6 = vpop.f32.mrf.mxu0  ;;  %v689_v7 = vsel %vm495_vm6, %v688_v5, -inf }
 0x42e   : > { %v631_v9 = vsel %vm489_vm7, -1e+30, %v627_v6  ;;  %v548_v10 = vpop.f32.mrf.mxu2  ;;  %690 = vmax.xlane.f32.xlu0 %v689_v7 }
 0x42f   : > { %v632_v11 = vsel %vm495_vm6, %v631_v9, -inf }
 0x430   : > { %633 = vmax.xlane.f32.xlu2 %v632_v11 }
 0x433   : > { %v686_v12 = vpop.f32.mrf.mxu3 }
 0x435   : > { %v629_v13 = vpop.f32.mrf.mxu0 }
 0x436   : > { %v570_v14 = vpop.f32.mrf.mxu2 }
 0x437   : > { %v574_v15 = vsel %vm489_vm7, -1e+30, %v570_v14 }
 0x438   : > { %v575_v16 = vsel %vm495_vm6, %v574_v15, -inf }
 0x439   : > { %576 = vmax.xlane.f32.xlu1 %v575_v16  ;;  %v1104_v16 = vld [vmem:[%s1558_s10 + $0x38] sm:$0xff] }
 0x43a   : > { %924 = vmatpush.bf16.msrb.mxu3 %v1104_v16 }
 0x43e   : > { %v572_v17 = vpop.f32.mrf.mxu2 }
 0x43f   : > { %v1103_v17 = vld [vmem:[%s1558_s10 + $0x30] sm:$0xff] }
 0x440   : > { %925 = vmatpush.bf16.msrb.mxu3 %v1103_v17 }
 0x448   : > { %701 = vrot.lane.b32.xlu2 %v1410_v33, %s1263_s18 }
 0x4a1   : > { %v691_v28 = vpop.xlane.xlu0 %690 }
 0x4a2   : > { %v692_v29 = vsub.f32 %v688_v5, %v691_v28 }
 0x4a3   : > { %v634_v18 = vpop.xlane.xlu2 %633 }
 0x4a4   : > { %v635_v19 = vsub.f32 %v631_v9, %v634_v18  ;;  %v693_v30 = vmul.f32 1.442695, %v692_v29 }
 0x4a6   : > { %v636_v20 = vmul.f32 1.442695, %v635_v19 }
 0x4a8   : > { %1174 = vpow2.f32 %v636_v20 }
 0x4ab   : > { %v702_v41 = vpop.permute.xlu2 %701 }
 0x4ac   : > { %v577_v21 = vpop.xlane.xlu1 %576  ;;  %v707_v45 = vsel %vm533_vm5, %v702_v41, 0 }
 0x4ad   : > { %v578_v22 = vsub.f32 %v574_v15, %v577_v21  ;;  %v1096_v15 = vld [vmem:[%s1556_s8 + $0x8] sm:$0xff] }
 0x4ae   : > { %v1175_v23 = vpop.eup %1174 }
 0x4af   : > { %v579_v24 = vmul.f32 1.442695, %v578_v22  ;;  %v638_v25 = vsel %vm495_vm6, %v1175_v23, 0.0 }
 0x4b0   : > { %639 = vadd.xlane.f32.xlu0 %v638_v25  ;;  %v1162_v25 = vld [vmem:[%s1554_s6] ss:$0 sm:$0xff] }
 0x4b1   : > { %1176 = vpow2.f32 %v579_v24 }
 0x4b2   : > { %1178 = vpow2.f32 %v693_v30 }
 0x4b7   : > { %v1177_v26 = vpop.eup %1176 }
 0x4b8   : > { %v581_v27 = vsel %vm495_vm6, %v1177_v26, 0.0  ;;  %v1179_v31 = vpop.eup %1178 }
 0x4b9   : > { %582 = vadd.xlane.f32.xlu1 %v581_v27  ;;  %v695_v32 = vsel %vm495_vm6, %v1179_v31, 0.0 }
 0x4c4   : > { %644 = vrot.lane.b32.xlu0 %v1410_v33, %s1264_s19  ;;  %s1018_s19 = sshll.u32 %s402_s0, 3 }
 0x4c5   : > { %s404_s17 = scalar_lea.vmem [#allocation2], %s1018_s19  ;;  %s1210_s19 = scalar_lea.hbm %s1560_s12, 16 }
 0x4c6   : > { %s952_s18 = sshll.u32 %s404_s17, 4  ;;  %s953_s18 = int_to_ptr.vmem [resolvable:$true] %s952_s18 }
 0x4d2   : > { %587 = vrot.lane.b32.xlu1 %v1410_v33, %s1265_s20  ;;  %s1088_s20 = sshll.u32 %s1355_s25, 3  ;;  %s940_s25 = scalar_lea.sflag [#allocation3], %s402_s0 }
 0x4d3   : > { %s950_s16 = scalar_lea.hbm %s1560_s12, %s1088_s20 }
 0x4d4   : > { %s954_s1 = sshll.u32 %s950_s16, 4  ;;  %s955_s1 = int_to_ptr.hbm [resolvable:$true] %s954_s1 }
 0x4d5   : > { %s1204_s2 = sshra.s32 %s955_s1, 4  ;;  %s1205_s2 = int_to_ptr.hbm [resolvable:$true] %s1204_s2 }
 0x4d6   : > { %p1211_p0 = scmp.lt.s32.totalorder %s1205_s2, %s1560_s12 }
 0x4fc   : > { %696 = vadd.xlane.f32.xlu1 %v695_v32 }
 0x523   : > { %v640_v34 = vpop.xlane.xlu0 %639 }
 0x524   : > { %1180 = vrcp.f32 %v640_v34  ;;  %v1102_v34 = vld [vmem:[%s1558_s10 + $0x28] sm:$0xff] }
 0x525   : > { %926 = vmatpush.bf16.msrb.mxu3 %v1102_v34 }
 0x52a   : > { %v1181_v35 = vpop.eup %1180 }
 0x52b   : > { %v642_v36 = vmul.f32 %v1181_v35, %v1175_v23  ;;  %v1101_v35 = vld [vmem:[%s1558_s10 + $0x20] sm:$0xff] }
 0x52c   : > { %v583_v38 = vpop.xlane.xlu1 %582  ;;  %927 = vmatpush.bf16.msrb.mxu3 %v1101_v35 }
 0x52d   : > { %v643_v40 = vpack.c.bf16 %v642_v36, %v642_v36  ;;  %1182 = vrcp.f32 %v583_v38  ;;  %v1100_v36 = vld [vmem:[%s1558_s10 + $0x18] sm:$0xff]  ;;  %v1098_v38 = vld [vmem:[%s1558_s10 + $0x8] sm:$0xff] }
 0x530   : > { %928 = vmatpush.bf16.msrb.mxu3 %v1100_v36 }
 0x533   : > { %v1183_v33 = vpop.eup %1182 }
 0x534   : > { %v585_v42 = vmul.f32 %v1183_v33, %v1177_v26 }
 0x536   : > { %v645_v37 = vpop.permute.xlu0 %644  ;;  %v586_v46 = vpack.c.bf16 %v585_v42, %v585_v42 }
 0x537   : > { %v650_v39 = vsel %vm533_vm5, %v645_v37, 0  ;;  %v1099_v37 = vld [vmem:[%s1558_s10 + $0x10] sm:$0xff] }
 0x538   : > { %659 = vmatpush.bf16.msrb.mxu1 %v650_v39  ;;  %929 = vmatpush.bf16.msrb.mxu3 %v1099_v37  ;;  %v1097_v39 = vld [vmem:[%s1558_s10] sm:$0xff] }
 0x53b   : > { %1034 = vmatmul.msk.bf16.vlgmr.msrb.gmra.mxu1 %vm495_vm6, %v643_v40  ;;  %v1164_v40 = vld [vmem:[%s1557_s9] ss:$0 sm:$0xff] }
 0x53c   : > { %839 = vmatpush.bf16.msra.mxu1 %v1096_v15  ;;  %930 = vmatpush.bf16.msrb.mxu3 %v1098_v38 }
 0x540   : > { %931 = vmatpush.bf16.msrb.mxu3 %v1097_v39 }
 0x544   : > { %v588_v43 = vpop.permute.xlu1 %587 }
 0x545   : > { %v593_v44 = vsel %vm533_vm5, %v588_v43, 0 }
 0x546   : > { %602 = vmatpush.bf16.msra.mxu2 %v593_v44 }
 0x549   : > { %1032 = vmatmul.msk.bf16.vlgmr.msra.gmra.mxu2 %vm495_vm6, %v586_v46 }
 0x54a   : > { %716 = vmatpush.bf16.msrb.mxu2 %v707_v45 }
 0x56f   : > { %v697_v47 = vpop.xlane.xlu1 %696 }
 0x570   : > { %1184 = vrcp.f32 %v697_v47 }
 0x576   : > { %v1185_v48 = vpop.eup %1184 }
 0x577   : > { %v699_v49 = vmul.f32 %v1185_v48, %v1179_v31 }
 0x579   : > { %v700_v50 = vpack.c.bf16 %v699_v49, %v699_v49 }
 0x57b   : > { %1036 = vmatmul.msk.bf16.vlgmr.msrb.gmra.mxu2 %vm495_vm6, %v700_v50 }
 0x5b8   : > { %v661_v51 = vpop.f32.mrf.mxu1 }
 0x5b9   : > { %727 = vrot.lane.b32.xlu0 %v661_v51, %s1266_s26  ;;  %s1206_s26 = scalar_lea.hbm %s1205_s2, 8 }
 0x5ba   : > { %p1207_p11 = scmp.ne.s32.totalorder %s1205_s2, %s1206_s26  ;;  %p1212_p1 = scmp.lt.s32.totalorder %s1210_s19, %s1206_s26 }
 0x5bc   : > { %p1208_p12 = pnand %p1207_p11, %p1372_p5  ;;  %p1213_p2 = por %p1212_p1, %p1211_p0 }
 0x5be   : > { %p1209_p13 = pneg %p1208_p12 }
 0x5c0   : > { %v663_v52 = vpop.f32.mrf.mxu1  ;;  %p1214_p3 = pnand %p1213_p2, %p1209_p13 }
 0x5cc   : > { %v604_v53 = vpop.f32.mrf.mxu2 }
 0x5cd   : > { %723 = vrot.lane.b32.xlu2 %v604_v53, %s1267_s28  ;;  %v1165_v53 = vld [vmem:[%s1559_s11] ss:$0 sm:$0xff] }
 0x5d4   : > { %v606_v54 = vpop.f32.mrf.mxu2 }
 0x5fe   : > { %v718_v55 = vpop.f32.mrf.mxu2 }
 0x5ff   : > { %731 = vrot.lane.b32.xlu2 %v718_v55, %s1268_s29 }
 0x606   : > { %v720_v56 = vpop.f32.mrf.mxu2 }
 0x627   : > { %v724_v59 = vpop.permute.xlu2 %723 }
 0x628   : > { %v734_v61 = vsel %vm495_vm6, %v1430_v3, %v724_v59 }
 0x62b   : > { %v728_v60 = vpop.permute.xlu0 %727 }
 0x62c   : > { %v736_v62 = vsel %vm735_vm8, %v734_v61, %v728_v60 }
 0x659   : > { %v732_v63 = vpop.permute.xlu2 %731 }
 0x65a   : > { %v738_v1 = vsel %vm737_vm9, %v736_v62, %v732_v63 }
 0x65b   : > { %v739_v2 = vpack.c.bf16 %v738_v1, %v738_v1 }
 0x65d   : > { %1045 = vmatmul.msk.bf16.vlgmr.msra.gmra.mxu0 %vm413_vm0, %v739_v2 }
 0x6da   : > { %v772_v5 = vpop.f32.mrf.mxu0 }
 0x6db   : > { %v773_v6 = vadd.f32 %v1161_v4, %v772_v5 }
 0x6dd   : > { %v1463_v7 = vadd.f32 %v773_v6, %v1387_v0  ;;  %v1095_v0 = vld [vmem:[%s1556_s8] sm:$0xff] }
 0x6de   : > { %840 = vmatpush.bf16.msra.mxu1 %v1095_v0 }
 0x6df   : > { %v779_v9 = vsel %vm413_vm0, %v1463_v7, 0.0 }
 0x6e0   : > { %780 = vadd.xlane.f32.xlu0 %v779_v9 }
 0x6e2   : > { %v774_v3 = vpop.f32.mrf.mxu0 }
 0x753   : > { %v781_v10 = vpop.xlane.xlu0 %780 }
 0x754   : > { %v782_v11 = vmul.f32 %v781_v10, %v1391_v8 }
 0x756   : > { %v783_v12 = vsub.f32 %v1463_v7, %v782_v11 }
 0x758   : > { %v784_v13 = vmul.f32 %v783_v12, %v783_v12  ;;  %v792_v28 = vmul.f32 %v1162_v25, %v783_v12 }
 0x75a   : > { %v785_v14 = vsel %vm413_vm0, %v784_v13, 0.0 }
 0x75b   : > { %786 = vadd.xlane.f32.xlu1 %v785_v14 }
 0x7ce   : > { %v787_v18 = vpop.xlane.xlu1 %786 }
 0x7cf   : > { %v788_v19 = vmul.f32 %v787_v18, %v1391_v8  ;;  %v1163_v8 = vld [vmem:[%s1555_s7] ss:$0 sm:$0xff] }
 0x7d1   : > { %v793_v20 = vadd.f32 1e-05, %v788_v19 }
 0x7d3   : > { %1186 = vrsqrt.f32 %v793_v20  ;;  %vm800_vm11 = vweird.f32 %v793_v20 }
 0x7d9   : > { %v1187_v21 = vpop.eup %1186 }
 0x7da   : > { %v795_v22 = vmul.f32 %v1187_v21, %v793_v20  ;;  %vm801_vm10 = vweird.f32 %v1187_v21 }
 0x7db   : > { %vm802_vm12 = vmor %vm800_vm11, %vm801_vm10 }
 0x7dc   : > { %v796_v23 = vmul.f32 %v1187_v21, %v795_v22 }
 0x7de   : > { %v797_v24 = vmul.f32 0.5, %v796_v23 }
 0x7e0   : > { %v798_v26 = vsub.f32 1.5, %v797_v24 }
 0x7e2   : > { %v799_v27 = vmul.f32 %v1187_v21, %v798_v26 }
 0x7e4   : > { %v803_v29 = vsel %vm802_vm12, %v1187_v21, %v799_v27 }
 0x7e5   : > { %v804_v30 = vmul.f32 %v803_v29, %v792_v28 }
 0x7e7   : > { %v808_v31 = vadd.f32 %v1163_v8, %v804_v30 }
 0x7e9   : > { %v809_v32 = vpack.c.bf16 %v808_v31, %v808_v31 }
 0x7eb   : > { %1054 = vmatmul.msk.bf16.vlgmr.msra.gmra.mxu1 %vm413_vm0, %v809_v32 }
 0x868   : > { %v842_v33 = vpop.f32.mrf.mxu1 }
 0x869   : > { %v843_v41 = vadd.f32 %v1164_v40, %v842_v33 }
 0x86b   : > { %v847_v42 = vmul.f32 %v843_v41, %v843_v41  ;;  %v846_v49 = vmul.f32 0.5, %v843_v41 }
 0x86d   : > { %v848_v43 = vmul.f32 %v847_v42, %v843_v41 }
 0x86f   : > { %v849_v44 = vmul.f32 0.044715, %v848_v43 }
 0x870   : > { %v844_v45 = vpop.f32.mrf.mxu1 }
 0x871   : > { %v850_v46 = vadd.f32 %v849_v44, %v843_v41 }
 0x873   : > { %v851_v47 = vmul.f32 0.7978846, %v850_v46 }
 0x875   : > { %1188 = vtanh.f32 %v851_v47 }
 0x87b   : > { %v1189_v48 = vpop.eup %1188 }
 0x87c   : > { %v853_v50 = vadd.f32 1.0, %v1189_v48 }
 0x87e   : > { %v854_v51 = vmul.f32 %v853_v50, %v846_v49 }
 0x880   : > { %v855_v52 = vpack.c.bf16 %v854_v51, %v854_v51 }
 0x882   : > { %932 = vmatmul.bf16.vlgmr.msrb.gmra.mxu3 %v855_v52 }
 0x905   : > { %v933_v54 = vpop.f32.mrf.mxu3 }
 0x906   : > { %v934_v55 = vadd.f32 %v1165_v53, %v933_v54 }
 0x908   : > { %v937_v56 = vadd.f32 %v934_v55, %v1463_v7 }
 0x90a   : > { %938 = vst.msk [vmem:[%s404_s17] sm:$0xff] %vm413_vm0, %v937_v56 }
 0x90b   : > { %1217 = shalt.err (!%p1214_p3)
}
 0x90c   : > { %1105 = dma.vmem_to_hbm [thread:$0]  (%p1372_p5), %s953_s18, 128, %s955_s1, %s940_s25  }
 0x90d   : > { %v935_v57 = vpop.f32.mrf.mxu3 }
 0x90e PF: > { %p1111_p4 = scmp.ge.s32.totalorder %s1252_s24, 2  ;;  %s966_s0 = sand.u32 1, %s1240_s21  }
 0x90f   : > { %s967_s16 = scalar_lea.sflag [#allocation3], %s966_s0 }
 0x910   : > { %p1108_p7 = pnand %p1111_p4, %p1376_p6 }
 0x912   : > { %p1109_p8 = pneg %p1108_p7 }
 0x914   : > { %1235 = dma.done.wait (%p1109_p8), %s967_s16, 128  }
 0x915   : > { %1237 = vsyncadd (%p1109_p8), %s967_s16, 4294967168  ;;  %p22_p9 = scmp.ge.s32.totalorder %s1359_s27, 4   ;;  %s1569_s21 = smov %s1244_s22 }
 0x916   : > { %s1570_s22 = smov %s1248_s23  ;;  %s1571_s23 = smov %s1370_s30 }
 0x917   : > { %s1572_s24 = smov %s1359_s27  ;;  %24 = sbr.rel (!%p22_p9) target bundleno = 7 (0x7), region = 103 }
 0x91c   :  { %973 = vsyncpa [#allocation3], 1 }
 0x91d   :  { %975 = vsyncpa [#allocation3 + $0x1], 1 }

</bundles_post_ra>
